<compile_context>
chip_gen: v5e
topology: v5e:2x2
jax: 0.10.0
libtpu: 0.0.40
codegen_flags: <defaults>
</compile_context>

<pallas_src>
import jax
import jax.numpy as jnp
from jax.experimental import pallas as pl
from jax.experimental.pallas import tpu as pltpu


def ds_layer_kernel(x_ref, w0_ref, w1_ref, b_ref, o_ref):
    x = x_ref[...]                       # (TN, L, Din)
    w0 = w0_ref[...]                     # (Din, Dout)  == lin0.weight.T
    w1 = w1_ref[...]                     # (Din, Dout)  == lin1.weight.T
    b = b_ref[...]                       # (1, Dout)    == b0 + b1
    tn, L, d_in = x.shape
    d_out = w0.shape[1]

    xf = x.astype(jnp.float32)

    # lin1 on the per-set mean: reduce over the set dim, then a small matmul.
    m = jnp.sum(xf, axis=1) * (1.0 / L)                            # (TN, Din)
    y1 = jnp.dot(m, w1.astype(jnp.float32),
                 preferred_element_type=jnp.float32)               # (TN, Dout)

    # lin0 on every set element: collapse (TN, L) so the MXU sees one 2-D matmul.
    x2 = xf.reshape(tn * L, d_in)
    y0 = jnp.dot(x2, w0.astype(jnp.float32),
                 preferred_element_type=jnp.float32)               # (TN*L, Dout)
    y0 = y0.reshape(tn, L, d_out)

    out = y0 + y1[:, None, :] + b.astype(jnp.float32)              # broadcast over L
    o_ref[...] = out.astype(o_ref.dtype)


def ds_layer(x, w0, b0, w1, b1, *, batch_tile=None):
    """y = x @ w0.T + b0 + (x.mean(1, keepdims=True) @ w1.T + b1), fused."""
    N, L, d_in = x.shape
    d_out = w0.shape[0]
    assert w0.shape == (d_out, d_in) and w1.shape == (d_out, d_in)
    assert b0.shape == (d_out,) and b1.shape == (d_out,)

    # Lane-dense layouts: weights transposed to (Din, Dout), biases pre-summed.
    w0t = jnp.transpose(w0)              # (Din, Dout)
    w1t = jnp.transpose(w1)              # (Din, Dout)
    b = (b0 + b1).reshape(1, d_out)

    if batch_tile is None:
        # Largest power-of-two batch tile dividing N whose double-buffered
        # input+output blocks stay well under the v7x scoped-VMEM budget.
        batch_tile = 1
        for cand in (64, 32, 16, 8, 4, 2, 1):
            block_bytes = 2 * 2 * cand * L * (d_in + d_out) * 4   # 2x dbl-buffer
            if N % cand == 0 and block_bytes <= 8 * 1024 * 1024:
                batch_tile = cand
                break
    tn = batch_tile
    assert N % tn == 0, "batch_tile must divide the batch size"
    grid = (N // tn,)

    flops = 2 * N * L * d_in * d_out + 2 * N * d_in * d_out + N * L * d_in
    bytes_accessed = 4 * (N * L * d_in + 2 * d_in * d_out + d_out
                          + N * L * d_out)

    return pl.pallas_call(
        ds_layer_kernel,
        out_shape=jax.ShapeDtypeStruct((N, L, d_out), x.dtype),
        grid=grid,
        in_specs=[
            pl.BlockSpec((tn, L, d_in), lambda i: (i, 0, 0)),
            pl.BlockSpec((d_in, d_out), lambda i: (0, 0)),
            pl.BlockSpec((d_in, d_out), lambda i: (0, 0)),
            pl.BlockSpec((1, d_out), lambda i: (0, 0)),
        ],
        out_specs=pl.BlockSpec((tn, L, d_out), lambda i: (i, 0, 0)),
        compiler_params=pltpu.CompilerParams(
            dimension_semantics=("parallel",)),
        cost_estimate=pl.CostEstimate(
            flops=flops, transcendentals=0, bytes_accessed=bytes_accessed),
    )(x, w0t, w1t, b)


if __name__ == "__main__":
    # Small shapes consistent with DSLayer: x is (batch, set_size, d_in).
    batch, set_size, d_in, d_out = 8, 8, 32, 32

    key = jax.random.PRNGKey(0)
    kx, kw0, kb0, kw1, kb1 = jax.random.split(key, 5)
    x = jax.random.normal(kx, (batch, set_size, d_in), dtype=jnp.float32)

    # Deterministic stand-ins for nn.Linear's default init.
    bound = 1.0 / (d_in ** 0.5)
    w0 = jax.random.uniform(kw0, (d_out, d_in), jnp.float32, -bound, bound)
    b0 = jax.random.uniform(kb0, (d_out,), jnp.float32, -bound, bound)
    w1 = jax.random.uniform(kw1, (d_out, d_in), jnp.float32, -bound, bound)
    b1 = jax.random.uniform(kb1, (d_out,), jnp.float32, -bound, bound)

    # batch_tile=2 -> grid=(4,): demonstrates pipelined batch tiling.
    out = jax.block_until_ready(ds_layer(x, w0, b0, w1, b1, batch_tile=2))

    # Plain-JAX reference: lin0(x) + lin1(x.mean(1, keepdim=True))
    ref = (jnp.einsum('nld,od->nlo', x, w0) + b0
           + (jnp.mean(x, axis=1) @ w1.T + b1)[:, None, :])
    assert out.shape == (batch, set_size, d_out)
    assert jnp.allclose(out, ref, atol=1e-4, rtol=1e-4), "mismatch vs reference"

    print("KERNEL_OK")
</pallas_src>

<mosaic_0001>
module attributes {stable_mosaic.version = 11 : i64} {
  func.func @ds_layer_kernel(%arg0: i32, %arg1: memref<2x8x32xf32, #tpu.memory_space<vmem>>, %arg2: memref<32x32xf32, #tpu.memory_space<vmem>>, %arg3: memref<32x32xf32, #tpu.memory_space<vmem>>, %arg4: memref<1x32xf32, #tpu.memory_space<vmem>>, %arg5: memref<2x8x32xf32, #tpu.memory_space<vmem>>) attributes {dimension_semantics = [#tpu.dimension_semantics<parallel>], iteration_bounds = array<i64: 4>, scalar_prefetch = 0 : i64, scratch_operands = 0 : i64, tpu.core_type = #tpu.core_type<tc>, window_params = [{transform_indices = @transform_0, window_bounds = array<i64: 2, 8, 32>}, {pipeline_mode = #tpu.pipeline_mode<synchronous>, transform_indices = @transform_1, window_bounds = array<i64: 32, 32>}, {pipeline_mode = #tpu.pipeline_mode<synchronous>, transform_indices = @transform_2, window_bounds = array<i64: 32, 32>}, {pipeline_mode = #tpu.pipeline_mode<synchronous>, transform_indices = @transform_3, window_bounds = array<i64: 1, 32>}, {transform_indices = @transform_4, window_bounds = array<i64: 2, 8, 32>}]} {
    %c0 = arith.constant 0 : index
    %c0_0 = arith.constant 0 : index
    %c0_1 = arith.constant 0 : index
    %0 = vector.load %arg1[%c0, %c0_0, %c0_1] : memref<2x8x32xf32, #tpu.memory_space<vmem>>, vector<2x8x32xf32>
    %c0_2 = arith.constant 0 : index
    %c0_3 = arith.constant 0 : index
    %1 = vector.load %arg2[%c0_2, %c0_3] : memref<32x32xf32, #tpu.memory_space<vmem>>, vector<32x32xf32>
    %c0_4 = arith.constant 0 : index
    %c0_5 = arith.constant 0 : index
    %2 = vector.load %arg3[%c0_4, %c0_5] : memref<32x32xf32, #tpu.memory_space<vmem>>, vector<32x32xf32>
    %c0_6 = arith.constant 0 : index
    %c0_7 = arith.constant 0 : index
    %3 = vector.load %arg4[%c0_6, %c0_7] : memref<1x32xf32, #tpu.memory_space<vmem>>, vector<1x32xf32>
    %cst = arith.constant dense<0.000000e+00> : vector<2x32xf32>
    %4 = vector.multi_reduction <add>, %0, %cst [1] : vector<2x8x32xf32> to vector<2x32xf32>
    %cst_8 = arith.constant 1.250000e-01 : f32
    %5 = vector.broadcast %cst_8 : f32 to vector<2x32xf32>
    %6 = arith.mulf %4, %5 : vector<2x32xf32>
    %cst_9 = arith.constant dense<0.000000e+00> : vector<2x32xf32>
    %7 = tpu.matmul %6, %2, %cst_9 {dimension_numbers = #tpu.dot_dimension_numbers<[1], [0], [0], [1], [0, 0, 1, 1], [], []>} : vector<2x32xf32>, vector<32x32xf32>, vector<2x32xf32> -> vector<2x32xf32>
    %8 = vector.shape_cast %0 : vector<2x8x32xf32> to vector<16x32xf32>
    %cst_10 = arith.constant dense<0.000000e+00> : vector<16x32xf32>
    %9 = tpu.matmul %8, %1, %cst_10 {dimension_numbers = #tpu.dot_dimension_numbers<[1], [0], [0], [1], [0, 0, 1, 1], [], []>} : vector<16x32xf32>, vector<32x32xf32>, vector<16x32xf32> -> vector<16x32xf32>
    %10 = vector.shape_cast %9 : vector<16x32xf32> to vector<2x8x32xf32>
    %11 = vector.shape_cast %7 : vector<2x32xf32> to vector<2x1x32xf32>
    %12 = vector.broadcast %11 : vector<2x1x32xf32> to vector<2x8x32xf32>
    %13 = arith.addf %10, %12 : vector<2x8x32xf32>
    %14 = vector.shape_cast %3 : vector<1x32xf32> to vector<1x1x32xf32>
    %15 = vector.broadcast %14 : vector<1x1x32xf32> to vector<2x8x32xf32>
    %16 = arith.addf %13, %15 : vector<2x8x32xf32>
    %c0_11 = arith.constant 0 : index
    %c0_12 = arith.constant 0 : index
    %c0_13 = arith.constant 0 : index
    %17 = vector.load %arg5[%c0_11, %c0_12, %c0_13] : memref<2x8x32xf32, #tpu.memory_space<vmem>>, vector<2x8x32xf32>
    tpu.vector_store %arg5[%c0_11, %c0_12, %c0_13], %16 {strides = array<i32>} : memref<2x8x32xf32, #tpu.memory_space<vmem>>, vector<2x8x32xf32>,
    return
  }
  func.func @transform_0(%arg0: i32) -> (i32, i32, i32) {
    %c0_i32 = arith.constant 0 : i32
    %c0_i32_0 = arith.constant 0 : i32
    %c0_i32_1 = arith.constant 0 : i32
    return %arg0, %c0_i32, %c0_i32_0 : i32, i32, i32
  }
  func.func @transform_1(%arg0: i32) -> (i32, i32) {
    %c0_i32 = arith.constant 0 : i32
    %c0_i32_0 = arith.constant 0 : i32
    %c0_i32_1 = arith.constant 0 : i32
    return %c0_i32, %c0_i32_0 : i32, i32
  }
  func.func @transform_2(%arg0: i32) -> (i32, i32) {
    %c0_i32 = arith.constant 0 : i32
    %c0_i32_0 = arith.constant 0 : i32
    %c0_i32_1 = arith.constant 0 : i32
    return %c0_i32, %c0_i32_0 : i32, i32
  }
  func.func @transform_3(%arg0: i32) -> (i32, i32) {
    %c0_i32 = arith.constant 0 : i32
    %c0_i32_0 = arith.constant 0 : i32
    %c0_i32_1 = arith.constant 0 : i32
    return %c0_i32, %c0_i32_0 : i32, i32
  }
  func.func @transform_4(%arg0: i32) -> (i32, i32, i32) {
    %c0_i32 = arith.constant 0 : i32
    %c0_i32_0 = arith.constant 0 : i32
    %c0_i32_1 = arith.constant 0 : i32
    return %arg0, %c0_i32, %c0_i32_0 : i32, i32, i32
  }
}

</mosaic_0001>

<bundles_post_ra>
// kernel: tpu_custom_call.1
= control target key start
LH: loop header
LB: loop body
LE: loop exit
PB: predicated region body
PF: predicated region fallthrough
CT: control target
= control target key end

     0   :  { %9 = vsyncpa [#allocation3], 0  ;;  %s913_s0 = inlined_call_operand.hbm [shape: f32[8,8,32], index: 0, kind: input, shape index: {}]   ;;  %s914_s1 = inlined_call_operand.hbm [shape: f32[32,32], index: 1, kind: input, shape index: {}]   ;;  %s915_s2 = inlined_call_operand.hbm [shape: f32[32,32], index: 2, kind: input, shape index: {}]   ;;  %s916_s3 = inlined_call_operand.vmem [shape: f32[1,32], index: 3, kind: input, shape index: {}]   ;;  %s917_s4 = inlined_call_operand.hbm [shape: f32[8,8,32], index: 4, kind: output, shape index: {}]  }
   0x1   :  { %11 = vsyncpa [#allocation3 + $0x1], 0 }
   0x2   :  { %12 = vsyncpa [#allocation6], 0 }
   0x3   :  { %13 = vsyncpa [#allocation4], 0 }
   0x4   :  { %15 = vsyncpa [#allocation4 + $0x1], 0  ;;  %s751_s15 = smov 0   ;;  %s753_s16 = smov 0  }
   0x5   :  { %s755_s17 = smov 0   ;;  %s757_s18 = smov 0  }
   0x6 LB: > { %s772_s19 = sadd.s32 4294967295, %s718_s18   ;;  %s459_s20 = sadd.s32 4294967294, %s718_s18   ;;  %s718_s18 = sphi %s757_s18, %s926_s18   ;;  %s714_s17 = sphi %s755_s17, %s925_s17   ;;  %s710_s16 = sphi %s753_s16, %s924_s16   ;;  %s706_s15 = sphi %s751_s15, %s923_s15  }
   0x7   : > { %p41_p0 = scmp.ne.s32.totalorder %s710_s16, %s706_s15  ;;  %p42_p1 = scmp.eq.s32.totalorder %s772_s19, 0 }
   0x8   : > { %p128_p2 = scmp.eq.s32.totalorder %s772_s19, 3  ;;  %p134_p3 = scmp.eq.s32.totalorder %s459_s20, 3 }
   0x9   : > { %p781_p4 = por %p42_p1, %p41_p0  ;;  %p460_p5 = scmp.ge.s32.totalorder %s718_s18, 1 }
   0xa   : > { %p786_p6 = por %p134_p3, %p41_p0  ;;  %p141_p7 = scmp.lt.s32.totalorder %s718_s18, 5 }
   0xb   : > { %s152_s25 = sshll.u32 %s914_s1, 4  ;;  %s720_s27 = smov [#allocation5]   ;;  %s153_s25 = int_to_ptr.hbm [resolvable:$true] %s152_s25 }
   0xc   : > { %p794_p8 = pnand %p460_p5, %p141_p7  ;;  %s154_s28 = sshll.u32 %s720_s27, 4  ;;  %s155_s28 = int_to_ptr.vmem [resolvable:$true] %s154_s28 }
   0xd   : > { %s166_s5 = sshll.u32 %s915_s2, 4  ;;  %s721_s6 = smov 128   ;;  %s167_s5 = int_to_ptr.hbm [resolvable:$true] %s166_s5 }
   0xe   : > { %p498_p9 = pneg %p794_p8  ;;  %s722_s7 = smov 8  }
   0xf   : > { %s723_s8 = smov [#allocation7]   ;;  %s812_s10 = sadd.s32 1, %s718_s18  }
  0x10   : > { %p499_p10 = pnand %p498_p9, %p42_p1  ;;  %s168_s9 = sshll.u32 %s723_s8, 4  ;;  %s169_s9 = int_to_ptr.vmem [resolvable:$true] %s168_s9 }
  0x11   : > { %s28_s11 = sadd.s32 1, %s714_s17  ;;  %s25_s12 = ssub.s32 %s718_s18, %s812_s10 }
  0x12   : > { %501 = dma.hbm_to_vmem [thread:$0]  (!%p499_p10), %s153_s25, 512, %s155_s28, [#allocation6], %s721_s6, %s721_s6, %s722_s7  }
  0x13   : > { %504 = dma.hbm_to_vmem [thread:$0]  (!%p499_p10), %s167_s5, 512, %s169_s9, [#allocation6], %s721_s6, %s721_s6, %s722_s7  }
  0x14   : > { %p35_p11 = scmp.ne.s32.totalorder %s714_s17, %s710_s16  ;;  %p26_p12 = scmp.eq.s32.totalorder %s25_s12, 0 }
  0x15   : > { %p36_p13 = scmp.eq.s32.totalorder %s718_s18, 0  ;;  %p515_p3 = scmp.lt.s32.totalorder %s718_s18, 4 }
  0x16   : > { %p822_p0 = por %p128_p2, %p35_p11  ;;  %s185_s20 = sand.u32 1, %s714_s17  }
  0x17   : > { %s828_s14 = scalar_select %p26_p12, %s714_s17, %s28_s11  }
  0x18   : > { %p37_p5 = por %p36_p13, %p35_p11  ;;  %s464_s23 = sshll.u32 %s185_s20, 4 }
  0x19   : > { %s480_s24 = sshll.u32 %s718_s18, 4  ;;  %s189_s29 = scalar_lea.vmem [#allocation2], %s464_s23 }
  0x1a   : > { %s194_s28 = scalar_lea.hbm %s913_s0, %s480_s24  ;;  %s197_s30 = sshll.u32 %s189_s29, 4  ;;  %s198_s30 = int_to_ptr.vmem [resolvable:$true] %s197_s30 }
  0x1b   : > { %s195_s5 = sshll.u32 %s194_s28, 4  ;;  %p835_p2 = pnand %p515_p3, %p37_p5  ;;  %s196_s5 = int_to_ptr.hbm [resolvable:$true] %s195_s5 }
  0x1c   : > { %s186_s9 = scalar_lea.sflag [#allocation3], %s185_s20  ;;  %s618_s11 = sshra.s32 %s196_s5, 4  ;;  %s619_s11 = int_to_ptr.hbm [resolvable:$true] %s618_s11 }
  0x1d   : > { %s620_s12 = scalar_lea.hbm %s619_s11, 16  ;;  %p622_p9 = pneg %p835_p2 }
  0x1e   : > { %p621_p7 = scmp.ne.s32.totalorder %s619_s11, %s620_s12  ;;  %s625_s25 = scalar_lea.hbm %s913_s0, 64 }
  0x1f   : > { %p626_p12 = scmp.lt.s32.totalorder %s619_s11, %s913_s0  ;;  %p627_p13 = scmp.lt.s32.totalorder %s625_s25, %s620_s12 }
  0x20   : > { %p623_p10 = pnand %p622_p9, %p621_p7 }
  0x21   : > { %p628_p3 = por %p627_p13, %p626_p12 }
  0x22   : > { %p624_p11 = pneg %p623_p10 }
  0x24   : > { %p629_p5 = pnand %p628_p3, %p624_p11 }
  0x26   : > { %632 = shalt.err (!%p629_p5)
}
  0x27   : > { %508 = dma.hbm_to_vmem [thread:$0]  (!%p835_p2), %s196_s5, 256, %s198_s30, %s186_s9, %s721_s6, %s721_s6, %s722_s7  }
  0x28   : > { %209 = sbr.rel (%p794_p8) target bundleno = 206 (0xce), region = 36  ;;  %s855_s20 = sand.u32 (!%p794_p8), 1, %s710_s16  }
  0x29   : > { %s468_s29 = sshll.u32 (!%p794_p8), %s855_s20, 4  ;;  %s212_s11 = scalar_lea.sflag (!%p794_p8), [#allocation3], %s855_s20 }
  0x2a   : > { %s215_s12 = scalar_lea.vmem (!%p794_p8), [#allocation2], %s468_s29 }
  0x2d   : > { %693 = dma.done.wait (%p781_p4), %s212_s11, 256  }
  0x2e   : > { %695 = vsyncadd (%p781_p4), %s212_s11, 4294967040 }
  0x2f   : > { %697 = dma.done.wait (%p42_p1), [#allocation6], 1024  }
  0x30   : > { %699 = vsyncadd (%p42_p1), [#allocation6], 4294966272  ;;  %v258_v0 = vld [vmem:[#allocation5 + $0x18] sm:$0xff]  ;;  %v257_v2 = vld [vmem:[#allocation5 + $0x10] sm:$0xff]  ;;  %vm264_vm0 = vcmask 261120   ;;  %vm283_vm1 = vcmask 1041409  }
  0x31   : > { %v262_v1 = vld [vmem:[#allocation7 + $0x18] sm:$0xff]  ;;  %482 = vmatpush.msra.mxu2 %v258_v0  ;;  %v261_v3 = vld [vmem:[#allocation7 + $0x10] sm:$0xff]  ;;  %325 = vmatpush.msra.mxu1 %v258_v0  ;;  %v256_v4 = vld [vmem:[#allocation5 + $0x8] sm:$0xff]  ;;  %s481_s21 = sshll.u32 %s772_s19, 4  ;;  %s250_s8 = scalar_lea.vmem [#allocation8], %s468_s29 }
  0x32   : > { %299 = vmatpush.msra.mxu0 %v262_v1  ;;  %v260_v5 = vld [vmem:[#allocation7 + $0x8] sm:$0xff]  ;;  %v253_v8 = vld [vmem:[%s215_s12] sm:$0xff]  ;;  %s363_s7 = scalar_lea.hbm %s917_s4, %s481_s21  ;;  %s364_s19 = sshll.u32 %s250_s8, 4  ;;  %s365_s19 = int_to_ptr.vmem [resolvable:$true] %s364_s19 }
  0x33   : > { %v254_v6 = vld [vmem:[%s215_s12 + $0x8] sm:$0xff]  ;;  %483 = vmatpush.msra.mxu2 %v257_v2  ;;  %326 = vmatpush.msra.mxu1 %v257_v2  ;;  %v255_v9 = vld [vmem:[#allocation5] sm:$0xff]  ;;  %v265_v12 = vsel %vm264_vm0, %v253_v8, 0.0  ;;  %s366_s9 = sshll.u32 %s363_s7, 4  ;;  %s352_s24 = scalar_lea.sflag [#allocation4], %s855_s20  ;;  %s367_s9 = int_to_ptr.hbm [resolvable:$true] %s366_s9 }
  0x34   : > { %300 = vmatpush.msra.mxu0 %v261_v3  ;;  %v272_v7 = vsel %vm264_vm0, %v254_v6, 0.0  ;;  %v259_v11 = vld [vmem:[#allocation7] sm:$0xff]  ;;  %v266_v13 = vrot.slane %v265_v12, 4  ;;  %s662_s23 = sshra.s32 %s367_s9, 4  ;;  %s668_s29 = scalar_lea.hbm %s917_s4, 64  ;;  %s663_s23 = int_to_ptr.hbm [resolvable:$true] %s662_s23 }
  0x35   : > { %v273_v10 = vrot.slane %v272_v7, 4  ;;  %484 = vmatpush.msra.mxu2 %v256_v4  ;;  %327 = vmatpush.msra.mxu1 %v256_v4  ;;  %v557_v31 = vld [vmem:[%s916_s3] ss:$0 sm:$0xff]  ;;  %s664_s25 = scalar_lea.hbm %s663_s23, 16  ;;  %p669_p2 = scmp.lt.s32.totalorder %s663_s23, %s917_s4 }
  0x36   : > { %301 = vmatpush.msra.mxu0 %v260_v5  ;;  %v267_v15 = vadd.f32 %v266_v13, %v265_v12  ;;  %p665_p1 = scmp.ne.s32.totalorder %s663_s23, %s664_s25  ;;  %p670_p7 = scmp.lt.s32.totalorder %s668_s29, %s664_s25 }
  0x37   : > { %v274_v14 = vadd.f32 %v273_v10, %v272_v7  ;;  %485 = vmatpush.msra.mxu2 %v255_v9  ;;  %328 = vmatpush.msra.mxu1 %v255_v9 }
  0x38   : > { %302 = vmatpush.msra.mxu0 %v259_v11  ;;  %474 = vmatmul.msk.f32.vlgmr.msra.gmra.mxu2 %vm264_vm0, %v254_v6  ;;  %v268_v17 = vrot.slane %v267_v15, 2  ;;  %p666_p4 = pnand %p665_p1, %p822_p0  ;;  %p671_p9 = por %p670_p7, %p669_p2 }
  0x39   : > { %v275_v16 = vrot.slane %v274_v14, 2  ;;  %473 = vmatmul.msk.f32.vlgmr.msra.gmra.mxu1 %vm264_vm0, %v253_v8 }
  0x3a   : > { %v269_v19 = vadd.f32 %v268_v17, %v267_v15  ;;  %p667_p8 = pneg %p666_p4 }
  0x3b   : > { %v276_v18 = vadd.f32 %v275_v16, %v274_v14 }
  0x3c   : > { %v270_v21 = vrot.slane %v269_v19, 1  ;;  %p672_p10 = pnand %p671_p9, %p667_p8 }
  0x3d   : > { %v277_v20 = vrot.slane %v276_v18, 1 }
  0x3e   : > { %v271_v23 = vadd.f32 %v270_v21, %v269_v19 }
  0x3f   : > { %v278_v22 = vadd.f32 %v277_v20, %v276_v18 }
  0x40   : > { %v279_v25 = vmul.f32 0.125, %v271_v23 }
  0x41   : > { %v280_v24 = vmul.f32 0.125, %v278_v22 }
  0x43   : > { %v284_v26 = vsel %vm283_vm1, %v280_v24, %v279_v25 }
  0x44   : > { %472 = vmatmul.msk.f32.vlgmr.msra.gmra.mxu0 %vm264_vm0, %v284_v26 }
  0xb6   : > { %v330_v28 = vpop.f32.mrf.mxu1 }
  0xbb   : > { %v333_v32 = vpop.f32.mrf.mxu2 }
  0xc1   : > { %v304_v27 = vpop.f32.mrf.mxu0 }
  0xc2   : > { %v337_v29 = vrot.slane %v304_v27, 1  ;;  %v338_v30 = vperm.slane %v304_v27, 0 }
  0xc4   : > { %v339_v33 = vperm.slane %v337_v29, 0  ;;  %v342_v34 = vadd.f32 %v338_v30, %v330_v28 }
  0xc6   : > { %v347_v35 = vadd.f32 %v557_v31, %v342_v34  ;;  %v343_v36 = vadd.f32 %v339_v33, %v333_v32 }
  0xc8   : > { %349 = vst.msk [vmem:[%s250_s8] sm:$0xff] %vm264_vm0, %v347_v35  ;;  %v348_v37 = vadd.f32 %v557_v31, %v343_v36 }
  0xca   : > { %350 = vst.msk [vmem:[%s250_s8 + $0x8] sm:$0xff] %vm264_vm0, %v348_v37 }
  0xcb   : > { %675 = shalt.err (!%p672_p10)
}
  0xcc   : > { %s724_s20 = smov 128   ;;  %s725_s21 = smov 8  }
  0xcd   : > { %496 = dma.vmem_to_hbm [thread:$0]  (%p822_p0), %s365_s19, 256, %s367_s9, %s352_s24, %s724_s20, %s724_s20, %s725_s21  }
  0xce PF: > { %p518_p11 = scmp.ge.s32.totalorder %s718_s18, 2  ;;  %s381_s26 = sand.u32 1, %s706_s15  }
  0xcf   : > { %s382_s6 = scalar_lea.sflag [#allocation4], %s381_s26 }
  0xd0   : > { %p510_p12 = pnand %p518_p11, %p786_p6 }
  0xd2   : > { %p511_p13 = pneg %p510_p12 }
  0xd4   : > { %701 = dma.done.wait (%p511_p13), %s382_s6, 256  }
  0xd5   : > { %703 = vsyncadd (%p511_p13), %s382_s6, 4294967040  ;;  %p18_p3 = scmp.ge.s32.totalorder %s812_s10, 6   ;;  %s923_s15 = smov %s710_s16 }
  0xd6   : > { %s924_s16 = smov %s714_s17  ;;  %s925_s17 = smov %s828_s14 }
  0xd7   : > { %s926_s18 = smov %s812_s10  ;;  %20 = sbr.rel (!%p18_p3) target bundleno = 6 (0x6), region = 89 }
  0xdc   :  { %388 = vsyncpa [#allocation3], 1 }
  0xdd   :  { %390 = vsyncpa [#allocation3 + $0x1], 1 }
  0xde   :  { %391 = vsyncpa [#allocation6], 1 }
  0xdf   :  { %392 = vsyncpa [#allocation4], 1 }
  0xe0   :  { %394 = vsyncpa [#allocation4 + $0x1], 1 }

</bundles_post_ra>
